<compile_context>
chip_gen: v5e
topology: v5e:2x2
jax: 0.10.0
libtpu: 0.0.40
codegen_flags: <defaults>
</compile_context>

<pallas_src>
import math

import jax
import jax.numpy as jnp
from jax import lax
from jax.experimental import pallas as pl
from jax.experimental.pallas import tpu as pltpu


# ------------------------------- kernel -------------------------------------


def fused_patch_embed_kernel(key_ref, g_ref, pe_ref, alpha_ref, out_ref):
    """Fused embedding gather + alpha*PE + output projection (pre-folded).

    key_ref:   (bm, P)        int32  flattened keys p*V + x  (-1 => no hit)
    g_ref:     (P*V, dim_pad) bf16   folded table  emb_table @ W_chunk_p
    pe_ref:    (bm, dim_pad)  f32    projected positional-embedding rows
    alpha_ref: (1,)           f32    learnable alpha (SMEM)
    out_ref:   (bm, dim_pad)  f32
    """
    bm = out_ref.shape[0]
    PV = g_ref.shape[0]
    P = key_ref.shape[1]

    keys = key_ref[...]                                        # (bm, P) int32
    col = lax.broadcasted_iota(jnp.int32, (bm, PV), 1)         # (bm, P*V)
    hit = keys[:, 0:1] == col
    for p in range(1, P):                                      # static unroll, P small
        hit = jnp.logical_or(hit, keys[:, p:p + 1] == col)

    # Keys of different patch slots live in disjoint column ranges, so the
    # multi-hot has exactly one 1 per slot; one MXU matmul == sum_p gather(G_p).
    mh = jnp.where(hit, 1.0, 0.0).astype(g_ref.dtype)          # bf16, exact 0/1
    acc = jnp.dot(mh, g_ref[...], preferred_element_type=jnp.float32)
    out_ref[...] = acc + alpha_ref[0] * pe_ref[...]            # f32 epilogue (v5e-safe)


# --------------------------- plain-JAX glue ----------------------------------


def sine_positional_embedding(length: int, dim: int) -> jnp.ndarray:
    """Standard sinusoidal PE table, shape (length, dim)."""
    pos = jnp.arange(length, dtype=jnp.float32)[:, None]
    div = jnp.exp(
        jnp.arange(0, dim, 2, dtype=jnp.float32) * (-math.log(10000.0) / dim)
    )
    pe = jnp.zeros((length, dim), dtype=jnp.float32)
    pe = pe.at[:, 0::2].set(jnp.sin(pos * div))
    pe = pe.at[:, 1::2].set(jnp.cos(pos * div))
    return pe


def patch_embedding_forward(x, emb_table, alpha, w_out):
    """x: (bs, sl, P) int32 -> (bs, sl, dim) f32.

    emb_table: (V, E) f32; alpha: (1,) f32; w_out: (e_dim, dim) f32 or None (Identity).
    """
    bs, sl, P = x.shape
    V, E = emb_table.shape
    e_dim = P * E
    T = sl * P

    # out_lin == nn.Identity() is handled uniformly by folding against eye.
    w_eff = jnp.eye(e_dim, dtype=jnp.float32) if w_out is None else w_out
    dim = w_eff.shape[1]
    dim_pad = ((dim + 127) // 128) * 128          # lane-dense output (mult of 128)

    # ---- offline algebraic folding (parameters only, no runtime cost) ----
    # G[p, v, :] = emb_table[v] @ W[p*E:(p+1)*E, :]
    G = jnp.einsum("ve,ped->pvd", emb_table, w_eff.reshape(P, E, dim))   # (P, V, dim)
    g_flat = G.reshape(P * V, dim)
    g_flat = jnp.pad(g_flat, ((0, 0), (0, dim_pad - dim))).astype(jnp.bfloat16)

    pe = sine_positional_embedding(T, E)                                 # (T, E)
    pe_proj = pe.reshape(sl, e_dim) @ w_eff                              # (sl, dim) f32
    pe_proj = jnp.pad(pe_proj, ((0, 0), (0, dim_pad - dim)))
    M = bs * sl
    pe_rows = jnp.tile(pe_proj, (bs, 1))                                 # (M, dim_pad)

    # Flattened gather keys; out-of-range indices map to -1 (-> zero embedding).
    offs = (jnp.arange(P, dtype=jnp.int32) * V)[None, None, :]
    valid = (x >= 0) & (x < V)
    keys = jnp.where(valid, x.astype(jnp.int32) + offs, -1).reshape(M, P)

    # Row-block grid over the flattened (bs*sl) axis.
    bm = min(512, M)
    assert M % bm == 0, "test sizes keep bs*sl divisible by the row block"
    grid = (M // bm,)

    out_pad = pl.pallas_call(
        fused_patch_embed_kernel,
        out_shape=jax.ShapeDtypeStruct((M, dim_pad), jnp.float32),
        grid=grid,
        in_specs=[
            pl.BlockSpec((bm, P), lambda i: (i, 0)),            # indices
            pl.BlockSpec((P * V, dim_pad), lambda i: (0, 0)),   # folded table (resident)
            pl.BlockSpec((bm, dim_pad), lambda i: (i, 0)),      # projected PE rows
            pl.BlockSpec(memory_space=pltpu.MemorySpace.SMEM),  # alpha scalar
        ],
        out_specs=pl.BlockSpec((bm, dim_pad), lambda i: (i, 0)),
        compiler_params=pltpu.CompilerParams(
            dimension_semantics=("parallel",),
            vmem_limit_bytes=32 * 1024 * 1024,   # well under v7x's 64 MiB physical
        ),
    )(keys, g_flat, pe_rows, alpha)

    return out_pad[:, :dim].reshape(bs, sl, dim)


def reference_forward(x, emb_table, alpha, w_out):
    """Pure-JAX f32 reference mirroring the PyTorch forward."""
    bs, sl, P = x.shape
    T = sl * P
    E = emb_table.shape[1]
    x_ = x.reshape(bs, T)
    y = emb_table[x_]                               # (bs, T, E)
    pe = sine_positional_embedding(T, E)
    y = y + alpha[0] * pe[None]
    y = y.reshape(bs, sl, P * E)
    if w_out is not None:
        y = y @ w_out
    return y


# -------------------------------- main ---------------------------------------


if __name__ == "__main__":
    # Module hyper-params (small, consistent with __init__):
    codebook_size = 32
    n_patch = 4
    dim = 32
    mult = 2
    E = mult * dim // n_patch                       # per-code embedding width = 16
    e_dim = n_patch * mult * (dim // n_patch)       # 64 != dim -> Linear(e_dim, dim, bias=False)

    bs, sl, P = 2, 8, n_patch

    key = jax.random.PRNGKey(0)
    k_emb, k_w, k_x = jax.random.split(key, 3)

    # Deterministic synthetic parameters (not a checkpoint).
    emb_table = 0.02 * jax.random.normal(k_emb, (codebook_size, E), dtype=jnp.float32)
    emb_table = emb_table.at[codebook_size - 1].set(0.0)   # padding_idx row = zeros
    alpha = jnp.ones((1,), dtype=jnp.float32)               # SinePositionalEmbedding alpha (init 1.0)
    # torch Linear weight is (dim, e_dim); stored transposed as (e_dim, dim).
    w_out = 0.02 * jax.random.normal(k_w, (e_dim, dim), dtype=jnp.float32)
    if e_dim == dim:
        w_out = None  # nn.Identity() branch

    x = jax.random.randint(k_x, (bs, sl, P), 0, codebook_size, dtype=jnp.int32)

    out = patch_embedding_forward(x, emb_table, alpha, w_out)
    out = jax.block_until_ready(out)

    ref = reference_forward(x, emb_table, alpha, w_out)
    assert out.shape == (bs, sl, dim), out.shape
    # Tolerance sized for the bf16-quantized folded table (G error << 1e-4 here);
    # the dominant alpha*PE path stays in f32.
    assert jnp.allclose(out, ref, rtol=1e-3, atol=5e-4), float(jnp.max(jnp.abs(out - ref)))

    print("KERNEL_OK")
</pallas_src>

<mosaic_0001>
module attributes {stable_mosaic.version = 11 : i64} {
  func.func @fused_patch_embed_kernel(%arg0: i32, %arg1: memref<16x4xi32, #tpu.memory_space<vmem>>, %arg2: memref<128x128xbf16, #tpu.memory_space<vmem>>, %arg3: memref<16x128xf32, #tpu.memory_space<vmem>>, %arg4: memref<1xf32, #tpu.memory_space<smem>>, %arg5: memref<16x128xf32, #tpu.memory_space<vmem>>) attributes {dimension_semantics = [#tpu.dimension_semantics<parallel>], iteration_bounds = array<i64: 1>, scalar_prefetch = 0 : i64, scratch_operands = 0 : i64, tpu.core_type = #tpu.core_type<tc>, window_params = [{transform_indices = @transform_0, window_bounds = array<i64: 16, 4>}, {pipeline_mode = #tpu.pipeline_mode<synchronous>, transform_indices = @transform_1, window_bounds = array<i64: 128, 128>}, {transform_indices = @transform_2, window_bounds = array<i64: 16, 128>}, {transform_indices = @transform_3, window_bounds = array<i64: 1>}, {transform_indices = @transform_4, window_bounds = array<i64: 16, 128>}]} {
    %c0 = arith.constant 0 : index
    %c0_0 = arith.constant 0 : index
    %0 = vector.load %arg1[%c0, %c0_0] : memref<16x4xi32, #tpu.memory_space<vmem>>, vector<16x4xi32>
    %1 = tpu.iota {dimensions = array<i32: 1>} : vector<16x128xi32>
    %2 = vector.extract_strided_slice %0 {offsets = [0, 0], sizes = [16, 1], strides = [1, 1]} : vector<16x4xi32> to vector<16x1xi32>
    %3 = vector.broadcast %2 : vector<16x1xi32> to vector<16x128xi32>
    %4 = arith.cmpi eq, %3, %1 : vector<16x128xi32>
    %5 = vector.extract_strided_slice %0 {offsets = [0, 1], sizes = [16, 1], strides = [1, 1]} : vector<16x4xi32> to vector<16x1xi32>
    %6 = vector.broadcast %5 : vector<16x1xi32> to vector<16x128xi32>
    %7 = arith.cmpi eq, %6, %1 : vector<16x128xi32>
    %8 = arith.ori %4, %7 : vector<16x128xi1>
    %9 = vector.extract_strided_slice %0 {offsets = [0, 2], sizes = [16, 1], strides = [1, 1]} : vector<16x4xi32> to vector<16x1xi32>
    %10 = vector.broadcast %9 : vector<16x1xi32> to vector<16x128xi32>
    %11 = arith.cmpi eq, %10, %1 : vector<16x128xi32>
    %12 = arith.ori %8, %11 : vector<16x128xi1>
    %13 = vector.extract_strided_slice %0 {offsets = [0, 3], sizes = [16, 1], strides = [1, 1]} : vector<16x4xi32> to vector<16x1xi32>
    %14 = vector.broadcast %13 : vector<16x1xi32> to vector<16x128xi32>
    %15 = arith.cmpi eq, %14, %1 : vector<16x128xi32>
    %16 = arith.ori %12, %15 : vector<16x128xi1>
    %cst = arith.constant 1.000000e+00 : f32
    %cst_1 = arith.constant 0.000000e+00 : f32
    %17 = vector.broadcast %cst : f32 to vector<16x128xf32>
    %18 = vector.broadcast %cst_1 : f32 to vector<16x128xf32>
    %19 = arith.select %16, %17, %18 : vector<16x128xi1>, vector<16x128xf32>
    %20 = arith.truncf %19 : vector<16x128xf32> to vector<16x128xbf16>
    %c0_2 = arith.constant 0 : index
    %c0_3 = arith.constant 0 : index
    %21 = vector.load %arg2[%c0_2, %c0_3] : memref<128x128xbf16, #tpu.memory_space<vmem>>, vector<128x128xbf16>
    %cst_4 = arith.constant dense<0.000000e+00> : vector<16x128xf32>
    %22 = tpu.matmul %20, %21, %cst_4 {dimension_numbers = #tpu.dot_dimension_numbers<[1], [0], [0], [1], [0, 0, 1, 1], [], []>} : vector<16x128xbf16>, vector<128x128xbf16>, vector<16x128xf32> -> vector<16x128xf32>
    %c0_5 = arith.constant 0 : index
    %23 = memref.load %arg4[%c0_5] : memref<1xf32, #tpu.memory_space<smem>>
    %c0_6 = arith.constant 0 : index
    %c0_7 = arith.constant 0 : index
    %24 = vector.load %arg3[%c0_6, %c0_7] : memref<16x128xf32, #tpu.memory_space<vmem>>, vector<16x128xf32>
    %25 = vector.broadcast %23 : f32 to vector<16x128xf32>
    %26 = arith.mulf %25, %24 : vector<16x128xf32>
    %27 = arith.addf %22, %26 : vector<16x128xf32>
    %c0_8 = arith.constant 0 : index
    %c0_9 = arith.constant 0 : index
    %28 = vector.load %arg5[%c0_8, %c0_9] : memref<16x128xf32, #tpu.memory_space<vmem>>, vector<16x128xf32>
    tpu.vector_store %arg5[%c0_8, %c0_9], %27 {strides = array<i32>} : memref<16x128xf32, #tpu.memory_space<vmem>>, vector<16x128xf32>,
    return
  }
  func.func @transform_0(%arg0: i32) -> (i32, i32) {
    %c0_i32 = arith.constant 0 : i32
    %c0_i32_0 = arith.constant 0 : i32
    return %arg0, %c0_i32 : i32, i32
  }
  func.func @transform_1(%arg0: i32) -> (i32, i32) {
    %c0_i32 = arith.constant 0 : i32
    %c0_i32_0 = arith.constant 0 : i32
    %c0_i32_1 = arith.constant 0 : i32
    return %c0_i32, %c0_i32_0 : i32, i32
  }
  func.func @transform_2(%arg0: i32) -> (i32, i32) {
    %c0_i32 = arith.constant 0 : i32
    %c0_i32_0 = arith.constant 0 : i32
    return %arg0, %c0_i32 : i32, i32
  }
  func.func @transform_3(%arg0: i32) -> i32 {
    %c0_i32 = arith.constant 0 : i32
    %c0_i32_0 = arith.constant 0 : i32
    return %c0_i32 : i32
  }
  func.func @transform_4(%arg0: i32) -> (i32, i32) {
    %c0_i32 = arith.constant 0 : i32
    %c0_i32_0 = arith.constant 0 : i32
    return %arg0, %c0_i32 : i32, i32
  }
}

</mosaic_0001>

<bundles_post_ra>
// kernel: tpu_custom_call.1
= control target key start
LH: loop header
LB: loop body
LE: loop exit
PB: predicated region body
PF: predicated region fallthrough
CT: control target
= control target key end

     0   :  { %10 = vsyncpa [#allocation4], 0  ;;  %s352_s0 = inlined_call_operand.vmem [shape: s32[16,4], index: 0, kind: input, shape index: {}]   ;;  %s353_s1 = inlined_call_operand.hbm [shape: bf16[128,128], index: 1, kind: input, shape index: {}]   ;;  %s354_s2 = inlined_call_operand.vmem [shape: f32[16,128], index: 2, kind: input, shape index: {}]   ;;  %s355_s3 = inlined_call_operand.<no memory space> [shape: f32[1], index: 3, kind: input, shape index: {}]   ;;  %s356_s4 = inlined_call_operand.hbm [shape: f32[16,128], index: 4, kind: output, shape index: {}]  }
   0x1   :  { %11 = vsyncpa [#allocation5], 0  ;;  %s18_s17 = sshll.u32 %s353_s1, 4  ;;  %s295_s18 = smov [#allocation3]   ;;  %s19_s17 = int_to_ptr.hbm [resolvable:$true] %s18_s17 }
   0x2   :  { %s20_s19 = sshll.u32 %s295_s18, 4  ;;  %s296_s20 = smov 64   ;;  %s21_s19 = int_to_ptr.vmem [resolvable:$true] %s20_s19 }
   0x3   :  { %s297_s21 = smov 4  }
   0x4   :  { %26 = dma.hbm_to_vmem [thread:$0]  %s19_s17, 1024, %s21_s19, [#allocation4], %s296_s20, %s296_s20, %s297_s21  }
   0x5   :  { %291 = dma.done.wait [#allocation4], 1024  }
   0x6   :  { %292 = vsyncadd [#allocation4], 4294966272  ;;  %v298_v0 = vmov 1   ;;  %v299_v1 = vmov 0   ;;  %v300_v2 = vmov 2   ;;  %v35_v3 = vld [vmem:[%s352_s0] sm:$0xff]  ;;  %v37_v17 = vlaneseq }
   0x7   :  { %239 = vset.pattern.permute.xlu1 %v298_v0  ;;  %238 = vset.pattern.permute.xlu0 %v299_v1  ;;  %v226_v4 = vld [vmem:[#allocation3 + $0x38] sm:$0xff]  ;;  %v225_v5 = vld [vmem:[#allocation3 + $0x30] sm:$0xff]  ;;  %v36_v6 = vld [vmem:[%s352_s0 + $0x8] sm:$0xff]  ;;  %v301_v8 = vmov 3   ;;  %v302_v24 = vmov 1.0|1.0   ;;  %v99_v26 = vstv %s355_s3 }
   0x8   :  { %240 = vset.pattern.permute.xlu2 %v300_v2  ;;  %48 = vperm.xlu1 %239, %v35_v3   ;;  %v224_v7 = vld [vmem:[#allocation3 + $0x28] sm:$0xff]  ;;  %v223_v9 = vld [vmem:[#allocation3 + $0x20] sm:$0xff]  ;;  %v222_v10 = vld [vmem:[#allocation3 + $0x18] sm:$0xff]  ;;  %v38_v18 = vand.u32 127, %v37_v17  ;;  %s303_s30 = smov [#allocation6]   ;;  %s172_s8 = sshll.u32 %s356_s4, 4  ;;  %s173_s8 = int_to_ptr.hbm [resolvable:$true] %s172_s8 }
   0x9   :  { %40 = vperm.xlu0 %238, %v35_v3   ;;  %58 = vperm.xlu2 %240, %v35_v3   ;;  %v221_v11 = vld [vmem:[#allocation3 + $0x10] sm:$0xff]  ;;  %v220_v12 = vld [vmem:[#allocation3 + $0x8] sm:$0xff]  ;;  %v219_v13 = vld [vmem:[#allocation3] sm:$0xff]  ;;  %s170_s5 = sshll.u32 %s303_s30, 4  ;;  %s304_s3 = smov 128   ;;  %s171_s5 = int_to_ptr.vmem [resolvable:$true] %s170_s5 }
   0xa   :  { %150 = vmatpush.bf16.msra.mxu0 %v226_v4  ;;  %v97_v25 = vld [vmem:[%s354_s2] sm:$0xff]  ;;  %v98_v30 = vld [vmem:[%s354_s2 + $0x8] sm:$0xff]  ;;  %s305_s9 = smov 8  }
   0xb   :  { %v100_v27 = vmul.f32 %v99_v26, %v97_v25  ;;  %v101_v31 = vmul.f32 %v99_v26, %v98_v30 }
   0xe   :  { %151 = vmatpush.bf16.msra.mxu0 %v225_v5 }
  0x10   :  { %51 = vperm.xlu1 %239, %v36_v6  }
  0x11   :  { %43 = vperm.xlu0 %238, %v36_v6   ;;  %61 = vperm.xlu2 %240, %v36_v6  }
  0x12   :  { %152 = vmatpush.bf16.msra.mxu0 %v224_v7 }
  0x16   :  { %153 = vmatpush.bf16.msra.mxu0 %v223_v9 }
  0x18   :  { %242 = vset.pattern.permute.xlu1 %v301_v8 }
  0x19   :  { %241 = vset.pattern.permute.xlu0 %v301_v8  ;;  %71 = vperm.xlu1 %242, %v36_v6  }
  0x1a   :  { %68 = vperm.xlu0 %241, %v35_v3   ;;  %154 = vmatpush.bf16.msra.mxu0 %v222_v10 }
  0x1e   :  { %155 = vmatpush.bf16.msra.mxu0 %v221_v11 }
  0x22   :  { %156 = vmatpush.bf16.msra.mxu0 %v220_v12 }
  0x26   :  { %157 = vmatpush.bf16.msra.mxu0 %v219_v13 }
  0x63   :  { %v59_v16 = vpop.permute.xlu2 %58 }
  0x64   :  { %vm63_vm4 = vcmp.eq.s32.totalorder %v59_v16, %v38_v18 }
  0x6b   :  { %v62_v21 = vpop.permute.xlu2 %61 }
  0x6c   :  { %vm64_vm6 = vcmp.eq.s32.totalorder %v62_v21, %v38_v18 }
  0x7a   :  { %v49_v14 = vpop.permute.xlu1 %48 }
  0x7b   :  { %v41_v15 = vpop.permute.xlu0 %40  ;;  %vm53_vm0 = vcmp.eq.s32.totalorder %v49_v14, %v38_v18 }
  0x7c   :  { %vm45_vm1 = vcmp.eq.s32.totalorder %v41_v15, %v38_v18 }
  0x7d   :  { %vm55_vm5 = vmor %vm45_vm1, %vm53_vm0 }
  0x7e   :  { %vm65_vm8 = vmor %vm55_vm5, %vm63_vm4 }
  0x82   :  { %v52_v19 = vpop.permute.xlu1 %51 }
  0x83   :  { %v44_v20 = vpop.permute.xlu0 %43  ;;  %vm54_vm2 = vcmp.eq.s32.totalorder %v52_v19, %v38_v18 }
  0x84   :  { %vm46_vm3 = vcmp.eq.s32.totalorder %v44_v20, %v38_v18 }
  0x85   :  { %vm56_vm7 = vmor %vm46_vm3, %vm54_vm2 }
  0x86   :  { %vm66_vm9 = vmor %vm56_vm7, %vm64_vm6 }
  0x8b   :  { %v72_v22 = vpop.permute.xlu1 %71 }
  0x8c   :  { %v69_v23 = vpop.permute.xlu0 %68  ;;  %vm74_vm10 = vcmp.eq.s32.totalorder %v72_v22, %v38_v18 }
  0x8d   :  { %vm73_vm11 = vcmp.eq.s32.totalorder %v69_v23, %v38_v18  ;;  %vm76_vm12 = vmor %vm66_vm9, %vm74_vm10 }
  0x8e   :  { %vm75_vm13 = vmor %vm65_vm8, %vm73_vm11 }
  0x8f   :  { %vm217_vm14 = vmpackc.low %vm76_vm12, %vm75_vm13 }
  0x90   :  { %218 = vmatmul.msk.bf16.vlgmr.msra.gmra.mxu0 %vm217_vm14, %v302_v24 }
 0x10d   :  { %v159_v28 = vpop.f32.mrf.mxu0 }
 0x10e   :  { %v160_v29 = vadd.f32 %v159_v28, %v100_v27 }
 0x110   :  { %164 = vst [vmem:[#allocation6] sm:$0xff] %v160_v29 }
 0x115   :  { %v161_v32 = vpop.f32.mrf.mxu0 }
 0x116   :  { %v162_v33 = vadd.f32 %v161_v32, %v101_v31 }
 0x118   :  { %165 = vst [vmem:[#allocation6 + $0x8] sm:$0xff] %v162_v33 }
 0x119   :  { %178 = dma.vmem_to_hbm [thread:$0]  %s171_s5, 256, %s173_s8, [#allocation5], %s304_s3, %s304_s3, %s305_s9  }
 0x11a   :  { %293 = dma.done.wait [#allocation5], 256  }
 0x11b   :  { %294 = vsyncadd [#allocation5], 4294967040 }
 0x11c   :  { %183 = vsyncpa [#allocation4], 1 }
 0x11d   :  { %184 = vsyncpa [#allocation5], 1 }

</bundles_post_ra>
